<compile_context>
chip_gen: v7x
topology: tpu7x:2x2x1
jax: 0.10.0
libtpu: 0.0.40
codegen_flags: <defaults>
</compile_context>

<pallas_src>
import functools

import jax
import jax.numpy as jnp
from jax.experimental import pallas as pl
from jax.experimental.pallas import tpu as pltpu

_LANE = 128
_SUB = 8
# Double-buffered *input* VMEM budget (16 MiB -> ~2 MiB/buffer for P=3 f32),
# under the 32 MiB scoped limit requested below (OK on v5e/v6e/v7x).
_VMEM_INPUT_BUDGET = 16 * 1024 * 1024
_VMEM_LIMIT_BYTES = 32 * 1024 * 1024


def _cdiv(a, b):
    return -(-a // b)


def _round_up(a, b):
    return _cdiv(a, b) * b


def _round_down(a, b):
    return (a // b) * b


def _multi_bce_kernel(*refs, tile_rows, count, needs_mask):
    """One grid step = one (tile_rows, 128) row tile, covering ALL predictions.

    refs = (tgt_ref, pred_ref_0, ..., pred_ref_{P-1}, out_ref)
      tgt_ref   : (tile_rows, 128) target tile (fetched once, reused per pred)
      pred_ref_i: (tile_rows, 128) logits tile of prediction i (native dtype)
      out_ref   : (1, 8, 128)      sublane/lane-dense partial sums of this tile
    """
    tgt_ref = refs[0]
    pred_refs = refs[1:-1]
    out_ref = refs[-1]

    y = tgt_ref[...].astype(jnp.float32)

    if needs_mask:
        # Elements with flat index >= count are host zero-padding or
        # out-of-bounds garbage of a partial last block; discard them.
        # On interior tiles `limit` >= tile_rows*128 so the mask is all-true.
        base = pl.program_id(0) * (tile_rows * _LANE)
        limit = count - base
        within = (
            jax.lax.broadcasted_iota(jnp.int32, (tile_rows, _LANE), 0) * _LANE
            + jax.lax.broadcasted_iota(jnp.int32, (tile_rows, _LANE), 1)
        )
        mask = within < limit
    else:
        mask = None

    acc = jnp.zeros((_SUB, _LANE), jnp.float32)
    for pred_ref in pred_refs:
        x = pred_ref[...].astype(jnp.float32)
        # Numerically stable BCE-with-logits:
        #   max(x, 0) - x*y + log(1 + exp(-|x|))
        loss = jnp.maximum(x, 0.0) - x * y + jnp.log1p(jnp.exp(-jnp.abs(x)))
        if mask is not None:
            loss = jnp.where(mask, loss, 0.0)
        # Sublane-group reduce: pure vreg adds, no cross-sublane (XLU) work and
        # a full unmasked vreg store at the end of the tile.
        acc = acc + jnp.sum(loss.reshape(-1, _SUB, _LANE), axis=0)
    out_ref[...] = acc.reshape(1, _SUB, _LANE)


def _to_slab(x, m, slab_rows):
    """Row-major flatten + reshape to a lane-dense (slab_rows, 128) slab.

    Zero-copy (reshape only) when m == slab_rows*128; otherwise zero-pads."""
    flat = jnp.reshape(x, (-1,))
    pad = slab_rows * _LANE - m
    if pad:
        flat = jnp.pad(flat, (0, pad))
    return jnp.reshape(flat, (slab_rows, _LANE))


def multi_bce_loss(preds, target):
    """Equivalent of MultiBCELoss.forward with default BCEWithLogitsLoss
    (no per-element weight, mean reduction).  `preds` may be a single array
    or a list/tuple of arrays, each with the same shape as `target`."""
    if not isinstance(preds, (list, tuple)):
        preds = [preds]
    preds = list(preds)
    num_preds = len(preds)
    for p in preds:
        assert p.shape == target.shape, (p.shape, target.shape)

    m = int(target.size)
    # TODO(synk): the in-kernel int32 flat-index mask limits m to < 2**31.
    assert 0 < m < 2**31

    # Keep float targets in their native dtype (upcast in VMEM).  Non-float
    # 0/1 masks go to bf16: exact for small integers, half the traffic of f32.
    if not jnp.issubdtype(target.dtype, jnp.floating):
        target = target.astype(jnp.bfloat16)

    rows_total = _cdiv(m, _LANE)
    if m % _LANE == 0:
        slab_rows = rows_total                      # zero-copy reshape path
    else:
        slab_rows = _round_up(rows_total, _SUB)     # pad needed anyway; align

    # VMEM-budget-driven tile size (all inputs double-buffered).
    row_bytes = _LANE * (
        jnp.dtype(target.dtype).itemsize
        + sum(jnp.dtype(p.dtype).itemsize for p in preds)
    )
    budget_rows = max(32, _round_down(_VMEM_INPUT_BUDGET // (2 * row_bytes), 32))

    if slab_rows <= 2 * _SUB:
        # Tiny input: one tile, not worth splitting across cores.
        tile_rows = _round_up(slab_rows, _SUB)
    elif slab_rows <= budget_rows:
        # Fits one tile: split in two so both v7x TensorCores get work.
        tile_rows = _round_up(_cdiv(slab_rows, 2), _SUB)
    else:
        nt = _cdiv(slab_rows, budget_rows)
        nt += nt % 2                                # even tile count for 2 TCs
        tile_rows = min(budget_rows, _round_up(_cdiv(slab_rows, nt), _SUB))

    num_tiles = _cdiv(slab_rows, tile_rows)
    needs_mask = (num_tiles * tile_rows * _LANE) != m

    tgt_slab = _to_slab(target, m, slab_rows)
    pred_slabs = [_to_slab(p, m, slab_rows) for p in preds]

    kernel = functools.partial(
        _multi_bce_kernel, tile_rows=tile_rows, count=m, needs_mask=needs_mask
    )

    in_block = pl.BlockSpec((tile_rows, _LANE), lambda r: (r, 0))
    out_block = pl.BlockSpec((1, _SUB, _LANE), lambda r: (r, 0, 0))

    in_bytes = tgt_slab.size * tgt_slab.dtype.itemsize + sum(
        s.size * s.dtype.itemsize for s in pred_slabs
    )
    cost = pl.CostEstimate(
        flops=6 * num_preds * m,
        transcendentals=2 * num_preds * m,
        bytes_accessed=int(in_bytes + num_tiles * _SUB * _LANE * 4),
    )

    partials = pl.pallas_call(
        kernel,
        out_shape=jax.ShapeDtypeStruct((num_tiles, _SUB, _LANE), jnp.float32),
        grid_spec=pltpu.PrefetchScalarGridSpec(
            num_scalar_prefetch=0,
            grid=(num_tiles,),
            in_specs=[in_block] * (1 + num_preds),
            out_specs=out_block,
        ),
        compiler_params=pltpu.CompilerParams(
            dimension_semantics=("parallel",),       # each out block written once
            vmem_limit_bytes=_VMEM_LIMIT_BYTES,
        ),
        cost_estimate=cost,
    )(tgt_slab, *pred_slabs)

    # Tiny final reduction + single divide in plain JAX
    # (sum of per-pred means == global sum / count).
    return jnp.sum(partials) / jnp.float32(m)


def _reference(preds, target):
    """Plain-JAX reference (mirrors torch BCEWithLogitsLoss, mean reduction)."""
    if not isinstance(preds, (list, tuple)):
        preds = [preds]
    t = target.astype(jnp.float32)
    total = jnp.float32(0.0)
    for x in preds:
        x = x.astype(jnp.float32)
        l = jnp.maximum(x, 0.0) - x * t + jnp.log1p(jnp.exp(-jnp.abs(x)))
        total = total + jnp.mean(l)
    return total


if __name__ == "__main__":
    key = jax.random.PRNGKey(0)
    N, C, H, W = 2, 4, 16, 16   # NCHW, matching the PyTorch convention
    k1, k2, k3, k4, k5 = jax.random.split(key, 5)

    # Three multi-scale prediction logits + one binary target mask.
    preds = [
        jax.random.normal(k1, (N, C, H, W), dtype=jnp.float32),
        jax.random.normal(k2, (N, C, H, W), dtype=jnp.float32) * 2.0,
        jax.random.normal(k3, (N, C, H, W), dtype=jnp.float32) - 0.5,
    ]
    target = (jax.random.uniform(k4, (N, C, H, W)) > 0.5).astype(jnp.float32)

    loss = multi_bce_loss(preds, target)
    jax.block_until_ready(loss)
    ref = _reference(preds, target)
    assert jnp.allclose(loss, ref, rtol=1e-5, atol=1e-5), (loss, ref)

    # Single-tensor (non-list) path, as in the PyTorch module.
    single = multi_bce_loss(preds[0], target)
    jax.block_until_ready(single)
    assert jnp.allclose(single, _reference(preds[0], target), rtol=1e-5, atol=1e-5)

    # Odd (non-128-multiple) shape exercises the host-pad + mask path.
    odd_shape = (1, 1, 10, 13)
    odd_preds = [
        jax.random.normal(k5, odd_shape, dtype=jnp.float32),
        jax.random.normal(k1, odd_shape, dtype=jnp.float32) * 0.5,
    ]
    odd_target = (jax.random.uniform(k2, odd_shape) > 0.5).astype(jnp.float32)
    odd = multi_bce_loss(odd_preds, odd_target)
    jax.block_until_ready(odd)
    assert jnp.allclose(odd, _reference(odd_preds, odd_target), rtol=1e-5, atol=1e-5)

    # Larger 128-multiple shape: zero-copy slabs, 2 tiles (megacore split) with
    # a partially out-of-bounds last block handled by the in-kernel mask.
    big_shape = (2, 4, 50, 64)
    big_preds = [
        jax.random.normal(k3, big_shape, dtype=jnp.float32),
        jax.random.normal(k4, big_shape, dtype=jnp.float32) * 1.5,
        jax.random.normal(k5, big_shape, dtype=jnp.float32) - 0.25,
    ]
    big_target = (jax.random.uniform(k1, big_shape) > 0.5).astype(jnp.float32)
    big = multi_bce_loss(big_preds, big_target)
    jax.block_until_ready(big)
    assert jnp.allclose(big, _reference(big_preds, big_target), rtol=1e-5, atol=1e-5)

    print("KERNEL_OK")
</pallas_src>

<mosaic_0001>
module attributes {stable_mosaic.version = 11 : i64} {
  func.func @_multi_bce_kernel(%arg0: i32, %arg1: memref<16x128xf32, #tpu.memory_space<vmem>>, %arg2: memref<16x128xf32, #tpu.memory_space<vmem>>, %arg3: memref<16x128xf32, #tpu.memory_space<vmem>>, %arg4: memref<16x128xf32, #tpu.memory_space<vmem>>, %arg5: memref<1x8x128xf32, #tpu.memory_space<vmem>>) attributes {dimension_semantics = [#tpu.dimension_semantics<parallel>], iteration_bounds = array<i64: 1>, scalar_prefetch = 0 : i64, scratch_operands = 0 : i64, tpu.core_type = #tpu.core_type<tc>, window_params = [{transform_indices = @transform_0, window_bounds = array<i64: 16, 128>}, {transform_indices = @transform_1, window_bounds = array<i64: 16, 128>}, {transform_indices = @transform_2, window_bounds = array<i64: 16, 128>}, {transform_indices = @transform_3, window_bounds = array<i64: 16, 128>}, {transform_indices = @transform_4, window_bounds = array<i64: 1, 8, 128>}]} {
    %c0 = arith.constant 0 : index
    %c0_0 = arith.constant 0 : index
    %0 = vector.load %arg1[%c0, %c0_0] : memref<16x128xf32, #tpu.memory_space<vmem>>, vector<16x128xf32>
    %cst = arith.constant 0.000000e+00 : f32
    %1 = vector.broadcast %cst : f32 to vector<8x128xf32>
    %c0_1 = arith.constant 0 : index
    %c0_2 = arith.constant 0 : index
    %2 = vector.load %arg2[%c0_1, %c0_2] : memref<16x128xf32, #tpu.memory_space<vmem>>, vector<16x128xf32>
    %cst_3 = arith.constant 0.000000e+00 : f32
    %3 = vector.broadcast %cst_3 : f32 to vector<16x128xf32>
    %4 = arith.maximumf %2, %3 : vector<16x128xf32>
    %5 = arith.mulf %2, %0 : vector<16x128xf32>
    %6 = arith.subf %4, %5 : vector<16x128xf32>
    %7 = math.absf %2 : vector<16x128xf32>
    %cst_4 = arith.constant 0.000000e+00 : f32
    %8 = vector.broadcast %cst_4 : f32 to vector<16x128xf32>
    %9 = arith.subf %8, %7 : vector<16x128xf32>
    %10 = math.exp %9 : vector<16x128xf32>
    %11 = math.log1p %10 : vector<16x128xf32>
    %12 = arith.addf %6, %11 : vector<16x128xf32>
    %13 = vector.shape_cast %12 : vector<16x128xf32> to vector<2x8x128xf32>
    %cst_5 = arith.constant dense<0.000000e+00> : vector<8x128xf32>
    %14 = vector.multi_reduction <add>, %13, %cst_5 [0] : vector<2x8x128xf32> to vector<8x128xf32>
    %15 = arith.addf %1, %14 : vector<8x128xf32>
    %c0_6 = arith.constant 0 : index
    %c0_7 = arith.constant 0 : index
    %16 = vector.load %arg3[%c0_6, %c0_7] : memref<16x128xf32, #tpu.memory_space<vmem>>, vector<16x128xf32>
    %cst_8 = arith.constant 0.000000e+00 : f32
    %17 = vector.broadcast %cst_8 : f32 to vector<16x128xf32>
    %18 = arith.maximumf %16, %17 : vector<16x128xf32>
    %19 = arith.mulf %16, %0 : vector<16x128xf32>
    %20 = arith.subf %18, %19 : vector<16x128xf32>
    %21 = math.absf %16 : vector<16x128xf32>
    %cst_9 = arith.constant 0.000000e+00 : f32
    %22 = vector.broadcast %cst_9 : f32 to vector<16x128xf32>
    %23 = arith.subf %22, %21 : vector<16x128xf32>
    %24 = math.exp %23 : vector<16x128xf32>
    %25 = math.log1p %24 : vector<16x128xf32>
    %26 = arith.addf %20, %25 : vector<16x128xf32>
    %27 = vector.shape_cast %26 : vector<16x128xf32> to vector<2x8x128xf32>
    %cst_10 = arith.constant dense<0.000000e+00> : vector<8x128xf32>
    %28 = vector.multi_reduction <add>, %27, %cst_10 [0] : vector<2x8x128xf32> to vector<8x128xf32>
    %29 = arith.addf %15, %28 : vector<8x128xf32>
    %c0_11 = arith.constant 0 : index
    %c0_12 = arith.constant 0 : index
    %30 = vector.load %arg4[%c0_11, %c0_12] : memref<16x128xf32, #tpu.memory_space<vmem>>, vector<16x128xf32>
    %cst_13 = arith.constant 0.000000e+00 : f32
    %31 = vector.broadcast %cst_13 : f32 to vector<16x128xf32>
    %32 = arith.maximumf %30, %31 : vector<16x128xf32>
    %33 = arith.mulf %30, %0 : vector<16x128xf32>
    %34 = arith.subf %32, %33 : vector<16x128xf32>
    %35 = math.absf %30 : vector<16x128xf32>
    %cst_14 = arith.constant 0.000000e+00 : f32
    %36 = vector.broadcast %cst_14 : f32 to vector<16x128xf32>
    %37 = arith.subf %36, %35 : vector<16x128xf32>
    %38 = math.exp %37 : vector<16x128xf32>
    %39 = math.log1p %38 : vector<16x128xf32>
    %40 = arith.addf %34, %39 : vector<16x128xf32>
    %41 = vector.shape_cast %40 : vector<16x128xf32> to vector<2x8x128xf32>
    %cst_15 = arith.constant dense<0.000000e+00> : vector<8x128xf32>
    %42 = vector.multi_reduction <add>, %41, %cst_15 [0] : vector<2x8x128xf32> to vector<8x128xf32>
    %43 = arith.addf %29, %42 : vector<8x128xf32>
    %44 = vector.shape_cast %43 : vector<8x128xf32> to vector<1x8x128xf32>
    %c0_16 = arith.constant 0 : index
    %c0_17 = arith.constant 0 : index
    %c0_18 = arith.constant 0 : index
    %45 = vector.load %arg5[%c0_16, %c0_17, %c0_18] : memref<1x8x128xf32, #tpu.memory_space<vmem>>, vector<1x8x128xf32>
    tpu.vector_store %arg5[%c0_16, %c0_17, %c0_18], %44 {strides = array<i32>} : memref<1x8x128xf32, #tpu.memory_space<vmem>>, vector<1x8x128xf32>,
    return
  }
  func.func @transform_0(%arg0: i32) -> (i32, i32) {
    %c0_i32 = arith.constant 0 : i32
    %c0_i32_0 = arith.constant 0 : i32
    return %arg0, %c0_i32 : i32, i32
  }
  func.func @transform_1(%arg0: i32) -> (i32, i32) {
    %c0_i32 = arith.constant 0 : i32
    %c0_i32_0 = arith.constant 0 : i32
    return %arg0, %c0_i32 : i32, i32
  }
  func.func @transform_2(%arg0: i32) -> (i32, i32) {
    %c0_i32 = arith.constant 0 : i32
    %c0_i32_0 = arith.constant 0 : i32
    return %arg0, %c0_i32 : i32, i32
  }
  func.func @transform_3(%arg0: i32) -> (i32, i32) {
    %c0_i32 = arith.constant 0 : i32
    %c0_i32_0 = arith.constant 0 : i32
    return %arg0, %c0_i32 : i32, i32
  }
  func.func @transform_4(%arg0: i32) -> (i32, i32, i32) {
    %c0_i32 = arith.constant 0 : i32
    %c0_i32_0 = arith.constant 0 : i32
    %c0_i32_1 = arith.constant 0 : i32
    return %arg0, %c0_i32, %c0_i32_0 : i32, i32, i32
  }
}

</mosaic_0001>

<bundles_post_ra>
// kernel: tpu_custom_call.1
= control target key start
LH: loop header
LB: loop body
LE: loop exit
PB: predicated region body
PF: predicated region fallthrough
CT: control target
= control target key end

     0   :  { %9 = vsyncpa [#allocation3], 0  ;;  %s513_s0 = inlined_call_operand.hbm [shape: f32[16,128], index: 0, kind: input, shape index: {}]   ;;  %s514_s1 = inlined_call_operand.hbm [shape: f32[16,128], index: 1, kind: input, shape index: {}]   ;;  %s515_s2 = inlined_call_operand.hbm [shape: f32[16,128], index: 2, kind: input, shape index: {}]   ;;  %s516_s3 = inlined_call_operand.hbm [shape: f32[16,128], index: 3, kind: input, shape index: {}]   ;;  %s517_s4 = inlined_call_operand.hbm [shape: f32[1,8,128], index: 4, kind: output, shape index: {}]  }
   0x1   :  { %10 = vsyncpa [#allocation6], 0 }
   0x2   :  { %11 = vsyncpa [#allocation9], 0 }
   0x3   :  { %12 = vsyncpa [#allocation4], 0  ;;  %s356_s15 = smov [#allocation5]   ;;  %s357_s17 = smov [#allocation2]  }
   0x4   :  { %s30_s16 = sshll.u32 %s356_s15, 4  ;;  %s18_s18 = sshll.u32 %s357_s17, 4  ;;  %s31_s16 = int_to_ptr.vmem [resolvable:$true] %s30_s16  ;;  %s388_s18 = int_to_ptr.vmem [resolvable:$true] %s18_s18 }
   0x5   :  { %s238_s21 = scalar_lea.hbm %s514_s1, 256 }
   0x6   :  { %p239_p0 = scmp.ne.s32.totalorder %s514_s1, %s238_s21  ;;  %p242_p1 = scmp.lt.u32.totalorder %s238_s21, %s514_s1 }
   0x8   :  { %p244_p2 = pnand %p242_p1, %p239_p0 }
   0xa   :  { %247 = shalt.err (!%p244_p2)
}
   0xb   :  { %s248_s26 = scalar_lea.vmem %s31_s16, 256  ;;  %p253_p4 = scmp.lt.s32.totalorder %s31_s16, %s31_s16 }
   0xc   :  { %p249_p3 = scmp.ne.s32.totalorder %s31_s16, %s248_s26  ;;  %p254_p5 = scmp.lt.s32.totalorder %s248_s26, %s248_s26 }
   0xe   :  { %p255_p6 = por %p254_p5, %p253_p4 }
  0x10   :  { %p256_p7 = pnand %p255_p6, %p249_p3 }
  0x12   :  { %259 = shalt.err (!%p256_p7)
}
  0x13   :  { %s358_s27 = smov 128   ;;  %s359_s28 = smov 8  }
  0x14   :  { %36 = dma.hbm_to_vmem [thread:$0]  %s514_s1, 256, %s31_s16, [#allocation6], %s358_s27, %s358_s27, %s359_s28  }
  0x15   :  { %s260_s7 = scalar_lea.hbm %s513_s0, 256 }
  0x16   :  { %p261_p8 = scmp.ne.s32.totalorder %s513_s0, %s260_s7  ;;  %p264_p9 = scmp.lt.u32.totalorder %s260_s7, %s513_s0 }
  0x18   :  { %p266_p10 = pnand %p264_p9, %p261_p8 }
  0x1a   :  { %269 = shalt.err (!%p266_p10)
}
  0x1b   :  { %s270_s12 = scalar_lea.vmem %s388_s18, 256  ;;  %p275_p12 = scmp.lt.s32.totalorder %s388_s18, %s388_s18 }
  0x1c   :  { %p271_p11 = scmp.ne.s32.totalorder %s388_s18, %s270_s12  ;;  %p276_p13 = scmp.lt.s32.totalorder %s270_s12, %s270_s12 }
  0x1e   :  { %p277_p0 = por %p276_p13, %p275_p12 }
  0x20   :  { %p278_p1 = pnand %p277_p0, %p271_p11 }
  0x22   :  { %281 = shalt.err (!%p278_p1)
}
  0x23   :  { %24 = dma.hbm_to_vmem [thread:$0]  %s513_s0, 256, %s388_s18, [#allocation3], %s358_s27, %s358_s27, %s359_s28  }
  0x24   :  { %s360_s14 = smov [#allocation7]   ;;  %s361_s16 = smov [#allocation8]  }
  0x25   :  { %s42_s15 = sshll.u32 %s360_s14, 4  ;;  %s54_s17 = sshll.u32 %s361_s16, 4  ;;  %s43_s15 = int_to_ptr.vmem [resolvable:$true] %s42_s15  ;;  %s425_s17 = int_to_ptr.vmem [resolvable:$true] %s54_s17 }
  0x26   :  { %s282_s21 = scalar_lea.hbm %s515_s2, 256 }
  0x27   :  { %p283_p2 = scmp.ne.s32.totalorder %s515_s2, %s282_s21  ;;  %p286_p3 = scmp.lt.u32.totalorder %s282_s21, %s515_s2 }
  0x29   :  { %p288_p4 = pnand %p286_p3, %p283_p2 }
  0x2b   :  { %291 = shalt.err (!%p288_p4)
}
  0x2c   :  { %s292_s0 = scalar_lea.vmem %s43_s15, 256  ;;  %p297_p6 = scmp.lt.s32.totalorder %s43_s15, %s43_s15 }
  0x2d   :  { %p293_p5 = scmp.ne.s32.totalorder %s43_s15, %s292_s0  ;;  %p298_p7 = scmp.lt.s32.totalorder %s292_s0, %s292_s0 }
  0x2f   :  { %p299_p8 = por %p298_p7, %p297_p6 }
  0x31   :  { %p300_p9 = pnand %p299_p8, %p293_p5 }
  0x33   :  { %303 = shalt.err (!%p300_p9)
}
  0x34   :  { %48 = dma.hbm_to_vmem [thread:$0]  %s515_s2, 256, %s43_s15, [#allocation6], %s358_s27, %s358_s27, %s359_s28  }
  0x35   :  { %s304_s5 = scalar_lea.hbm %s516_s3, 256 }
  0x36   :  { %p305_p10 = scmp.ne.s32.totalorder %s516_s3, %s304_s5  ;;  %p308_p11 = scmp.lt.u32.totalorder %s304_s5, %s516_s3 }
  0x38   :  { %p310_p12 = pnand %p308_p11, %p305_p10 }
  0x3a   :  { %313 = shalt.err (!%p310_p12)
}
  0x3b   :  { %s314_s10 = scalar_lea.vmem %s425_s17, 256  ;;  %p319_p0 = scmp.lt.s32.totalorder %s425_s17, %s425_s17 }
  0x3c   :  { %p315_p13 = scmp.ne.s32.totalorder %s425_s17, %s314_s10  ;;  %p320_p1 = scmp.lt.s32.totalorder %s314_s10, %s314_s10 }
  0x3e   :  { %p321_p2 = por %p320_p1, %p319_p0 }
  0x40   :  { %p322_p3 = pnand %p321_p2, %p315_p13 }
  0x42   :  { %325 = shalt.err (!%p322_p3)
}
  0x43   :  { %60 = dma.hbm_to_vmem [thread:$0]  %s516_s3, 256, %s425_s17, [#allocation9], %s358_s27, %s358_s27, %s359_s28  }
  0x44   :  { %348 = dma.done.wait [#allocation3], 256  }
  0x45   :  { %349 = vsyncadd [#allocation3], 4294967040 }
  0x46   :  { %350 = dma.done.wait [#allocation6], 512  }
  0x47   :  { %351 = vsyncadd [#allocation6], 4294966784 }
  0x48   :  { %352 = dma.done.wait [#allocation9], 256  }
  0x49   :  { %353 = vsyncadd [#allocation9], 4294967040  ;;  %v75_v0 = vld [vmem:[#allocation5] sm:$0xff]  ;;  %v76_v1 = vld [vmem:[#allocation5 + $0x8] sm:$0xff]  ;;  %s362_s3 = smov [#allocation10]  }
  0x4a   :  { %v83_v2 = vand.u32 2147483647, %v75_v0  ;;  %v113_v3 = vld [vmem:[#allocation7] sm:$0xff]  ;;  %v84_v4 = vand.u32 2147483647, %v76_v1  ;;  %v462_v5 = vld [vmem:[#allocation7 + $0x8] sm:$0xff] }
  0x4b   :  { %v121_v8 = vand.u32 2147483647, %v113_v3  ;;  %v122_v10 = vand.u32 2147483647, %v462_v5  ;;  %v465_v11 = vld [vmem:[#allocation8] sm:$0xff]  ;;  %v467_v12 = vld [vmem:[#allocation8 + $0x8] sm:$0xff] }
  0x4c   :  { %v85_v6 = vsub.f32 0.0, %v83_v2  ;;  %v86_v7 = vsub.f32 0.0, %v84_v4  ;;  %v159_v17 = vand.u32 2147483647, %v465_v11  ;;  %v160_v18 = vand.u32 2147483647, %v467_v12 }
  0x4d   :  { %v123_v14 = vsub.f32 0.0, %v121_v8  ;;  %v124_v15 = vsub.f32 0.0, %v122_v10  ;;  %v73_v24 = vld [vmem:[#allocation2] sm:$0xff]  ;;  %v74_v26 = vld [vmem:[#allocation2 + $0x8] sm:$0xff]  ;;  %v77_v29 = vmax.f32 %v75_v0, 0.0  ;;  %v78_v33 = vmax.f32 %v76_v1, 0.0 }
  0x4e   :  { %v87_v9 = vmul.f32 1.442695, %v85_v6  ;;  %v89_v13 = vmul.f32 1.442695, %v86_v7  ;;  %v161_v20 = vsub.f32 0.0, %v159_v17  ;;  %v162_v21 = vsub.f32 0.0, %v160_v18 }
  0x4f   :  { %v125_v16 = vmul.f32 1.442695, %v123_v14  ;;  %v127_v19 = vmul.f32 1.442695, %v124_v15  ;;  %v79_v30 = vmul.f32 %v75_v0, %v73_v24  ;;  %v80_v34 = vmul.f32 %v76_v1, %v74_v26  ;;  %s196_s27 = sshll.u32 %s362_s3, 4  ;;  %s197_s27 = int_to_ptr.vmem [resolvable:$true] %s196_s27 }
  0x50   :  { %214 = vpow2.f32 %v87_v9  ;;  %v163_v22 = vmul.f32 1.442695, %v161_v20  ;;  %v165_v23 = vmul.f32 1.442695, %v162_v21  ;;  %v115_v39 = vmax.f32 %v113_v3, 0.0  ;;  %s326_s28 = scalar_lea.vmem %s197_s27, 128  ;;  %p331_p5 = scmp.lt.s32.totalorder %s197_s27, %s197_s27 }
  0x51   :  { %216 = vpow2.f32 %v89_v13  ;;  %v117_v40 = vmul.f32 %v113_v3, %v73_v24  ;;  %v81_v42 = vsub.f32 %v77_v29, %v79_v30  ;;  %v82_v44 = vsub.f32 %v78_v33, %v80_v34  ;;  %p327_p4 = scmp.ne.s32.totalorder %s197_s27, %s326_s28  ;;  %p332_p6 = scmp.lt.s32.totalorder %s326_s28, %s326_s28 }
  0x52   :  { %218 = vpow2.f32 %v125_v16  ;;  %v116_v45 = vmax.f32 %v462_v5, 0.0  ;;  %v118_v49 = vmul.f32 %v462_v5, %v74_v26  ;;  %v153_v58 = vmax.f32 %v465_v11, 0.0 }
  0x53   :  { %220 = vpow2.f32 %v127_v19  ;;  %v119_v54 = vsub.f32 %v115_v39, %v117_v40  ;;  %v154_v5 = vmax.f32 %v467_v12, 0.0  ;;  %v155_v6 = vmul.f32 %v465_v11, %v73_v24  ;;  %p333_p7 = por %p332_p6, %p331_p5 }
  0x54   :  { %222 = vpow2.f32 %v163_v22  ;;  %v120_v63 = vsub.f32 %v116_v45, %v118_v49  ;;  %v156_v13 = vmul.f32 %v467_v12, %v74_v26 }
  0x55   :  { %224 = vpow2.f32 %v165_v23  ;;  %v157_v29 = vsub.f32 %v153_v58, %v155_v6  ;;  %p334_p8 = pnand %p333_p7, %p327_p4 }
  0x56   :  { %v158_v30 = vsub.f32 %v154_v5, %v156_v13 }
  0x5a   :  { %v215_v25 = vpop.eup %214 }
  0x5b   :  { %v217_v27 = vpop.eup %216  ;;  %v91_v28 = vadd.f32 1.0, %v215_v25  ;;  %v94_v36 = vmul.f32 -0.5, %v215_v25  ;;  %v97_v52 = vand.u32 2147483647, %v215_v25 }
  0x5c   :  { %v100_v31 = vadd.f32 1.0, %v217_v27  ;;  %v219_v32 = vpop.eup %218  ;;  %v103_v38 = vmul.f32 -0.5, %v217_v27  ;;  %v106_v56 = vand.u32 2147483647, %v217_v27 }
  0x5d   :  { %226 = vlog2.f32 %v91_v28  ;;  %v221_v35 = vpop.eup %220  ;;  %v129_v37 = vadd.f32 1.0, %v219_v32  ;;  %v132_v46 = vmul.f32 -0.5, %v219_v32  ;;  %v95_v48 = vadd.f32 1.0, %v94_v36 }
  0x5e   :  { %228 = vlog2.f32 %v100_v31  ;;  %v138_v41 = vadd.f32 1.0, %v221_v35  ;;  %v223_v43 = vpop.eup %222  ;;  %v141_v50 = vmul.f32 -0.5, %v221_v35  ;;  %v104_v53 = vadd.f32 1.0, %v103_v38 }
  0x5f   :  { %230 = vlog2.f32 %v129_v37  ;;  %v225_v47 = vpop.eup %224  ;;  %v167_v51 = vadd.f32 1.0, %v223_v43  ;;  %v135_v57 = vand.u32 2147483647, %v219_v32  ;;  %v133_v59 = vadd.f32 1.0, %v132_v46 }
  0x60   :  { %232 = vlog2.f32 %v138_v41  ;;  %v176_v55 = vadd.f32 1.0, %v225_v47  ;;  %v144_v60 = vand.u32 2147483647, %v221_v35  ;;  %v170_v61 = vmul.f32 -0.5, %v223_v43 }
  0x61   :  { %234 = vlog2.f32 %v167_v51  ;;  %v96_v62 = vmul.f32 %v215_v25, %v95_v48  ;;  %v142_v0 = vadd.f32 1.0, %v141_v50  ;;  %v179_v1 = vmul.f32 -0.5, %v225_v47 }
  0x62   :  { %236 = vlog2.f32 %v176_v55  ;;  %vm474_vm0 = vcmp.lt.f32.partialorder %v97_v52, 0.0004427343  ;;  %v105_v4 = vmul.f32 %v217_v27, %v104_v53  ;;  %vm480_vm1 = vcmp.lt.f32.partialorder %v106_v56, 0.0004427343 }
  0x63   :  { %vm484_vm2 = vcmp.lt.f32.partialorder %v135_v57, 0.0004427343  ;;  %v134_v15 = vmul.f32 %v219_v32, %v133_v59  ;;  %vm489_vm3 = vcmp.lt.f32.partialorder %v144_v60, 0.0004427343  ;;  %v171_v17 = vadd.f32 1.0, %v170_v61 }
  0x64   :  { %v143_v19 = vmul.f32 %v221_v35, %v142_v0  ;;  %v173_v20 = vand.u32 2147483647, %v223_v43  ;;  %v180_v21 = vadd.f32 1.0, %v179_v1  ;;  %v182_v25 = vand.u32 2147483647, %v225_v47 }
  0x65   :  { %v172_v31 = vmul.f32 %v223_v43, %v171_v17 }
  0x66   :  { %vm174_vm4 = vcmp.lt.f32.partialorder %v173_v20, 0.0004427343  ;;  %v181_v35 = vmul.f32 %v225_v47, %v180_v21  ;;  %vm183_vm5 = vcmp.lt.f32.partialorder %v182_v25, 0.0004427343 }
  0x67   :  { %v227_v2 = vpop.eup %226 }
  0x68   :  { %v229_v7 = vpop.eup %228  ;;  %v93_v8 = vmul.f32 0.6931472, %v227_v2 }
  0x69   :  { %v102_v14 = vmul.f32 0.6931472, %v229_v7  ;;  %v231_v11 = vpop.eup %230 }
  0x6a   :  { %v99_v18 = vsel %vm474_vm0, %v96_v62, %v93_v8  ;;  %v233_v22 = vpop.eup %232  ;;  %v131_v12 = vmul.f32 0.6931472, %v231_v11 }
  0x6b   :  { %v108_v23 = vsel %vm480_vm1, %v105_v4, %v102_v14  ;;  %v109_v24 = vadd.f32 %v99_v18, %v81_v42  ;;  %v140_v27 = vmul.f32 0.6931472, %v233_v22  ;;  %v235_v32 = vpop.eup %234 }
  0x6c   :  { %v110_v26 = vadd.f32 %v108_v23, %v82_v44  ;;  %v137_v28 = vsel %vm484_vm2, %v134_v15, %v131_v12  ;;  %v237_v36 = vpop.eup %236  ;;  %v169_v39 = vmul.f32 0.6931472, %v235_v32 }
  0x6d   :  { %v146_v33 = vsel %vm489_vm3, %v143_v19, %v140_v27  ;;  %v147_v34 = vadd.f32 %v137_v28, %v119_v54  ;;  %v178_v40 = vmul.f32 0.6931472, %v237_v36 }
  0x6e   :  { %v111_v37 = vadd.f32 %v110_v26, %v109_v24  ;;  %v148_v38 = vadd.f32 %v146_v33, %v120_v63  ;;  %v175_v42 = vsel %vm174_vm4, %v172_v31, %v169_v39 }
  0x6f   :  { %v184_v44 = vsel %vm183_vm5, %v181_v35, %v178_v40  ;;  %v185_v45 = vadd.f32 %v175_v42, %v157_v29 }
  0x70   :  { %v149_v41 = vadd.f32 %v148_v38, %v147_v34  ;;  %v186_v48 = vadd.f32 %v184_v44, %v158_v30 }
  0x72   :  { %v150_v46 = vadd.f32 %v149_v41, %v111_v37  ;;  %v187_v43 = vadd.f32 %v186_v48, %v185_v45 }
  0x74   :  { %v188_v49 = vadd.f32 %v187_v43, %v150_v46 }
  0x76   :  { %189 = vst [vmem:[#allocation10] sm:$0xff] %v188_v49 }
  0x77   :  { %337 = shalt.err (!%p334_p8)
}
  0x78   :  { %s338_s13 = scalar_lea.hbm %s517_s4, 128 }
  0x79   :  { %p339_p9 = scmp.ne.s32.totalorder %s517_s4, %s338_s13  ;;  %p342_p10 = scmp.lt.u32.totalorder %s338_s13, %s517_s4 }
  0x7b   :  { %p344_p11 = pnand %p342_p10, %p339_p9 }
  0x7d   :  { %347 = shalt.err (!%p344_p11)
}
  0x7e   :  { %199 = dma.vmem_to_hbm [thread:$0]  %s197_s27, 128, %s517_s4, [#allocation4]  }
  0x7f   :  { %354 = dma.done.wait [#allocation4], 128  }
  0x80   :  { %355 = vsyncadd [#allocation4], 4294967168 }
  0x81   :  { %203 = vsyncpa [#allocation3], 1 }
  0x82   :  { %204 = vsyncpa [#allocation6], 1 }
  0x83   :  { %205 = vsyncpa [#allocation9], 1 }
  0x84   :  { %206 = vsyncpa [#allocation4], 1 }

</bundles_post_ra>
